<compile_context>
chip_gen: v7x
topology: tpu7x:2x2x1
jax: 0.10.0
libtpu: 0.0.40
codegen_flags: <defaults>
</compile_context>

<pallas_src>
import functools

import jax
import jax.numpy as jnp
from jax.experimental import pallas as pl
from jax.experimental.pallas import tpu as pltpu

LEAKY_SLOPE = 0.2
BN_EPS = 1e-5


def _device_kind():
    try:
        return jax.devices()[0].device_kind.lower()
    except Exception:
        return ""


def _vmem_limit_bytes():
    # v5e/v6e have 128 MiB VMEM per TensorCore; v7x only 64 MiB -> conservative default.
    kind = _device_kind()
    if ("v5" in kind) or ("v6" in kind):
        return 100 * (1 << 20)
    return 44 * (1 << 20)


VMEM_LIMIT = _vmem_limit_bytes()
ATTN_VMEM_BUDGET = int(VMEM_LIMIT * 0.6)


def _leaky(y):
    return jnp.where(y > 0.0, y, LEAKY_SLOPE * y)


def _choose_tile(n, target):
    """Largest tile <= target that divides n and is a multiple of 8 (or n itself)."""
    if n <= target:
        return n
    t = target - (target % 8)
    while t >= 8:
        if n % t == 0:
            return t
        t -= 8
    return n


def _attn_tile(n, b, c, budget_bytes):
    # VMEM per TA row: y in (x2 bufs) + out (x2 bufs) + K/V scratch + accumulators.
    per_row = (6 * b * c + 2 * c) * 4
    cap = max(8, budget_bytes // max(per_row, 1))
    return _choose_tile(n, int(cap))


# --------------------------------------------------------------------------------------
# Kernel 1: pairwise -distance, in-kernel exact top-k (indices only) and the two
#           EdgeConv projections (packed [A | Bc]).   grid = (branch, batch, q-tiles)
# --------------------------------------------------------------------------------------
def _knn_proj_kernel(xq_ref, xk_ref, sqk_ref, wd_ref, wcd_ref, ab_ref, idx_ref, *, k):
    xq = xq_ref[0, 0]                                       # (TQ, Cin) f32
    xk = xk_ref[0, 0]                                       # (N,  Cin) f32
    xq_b = xq.astype(jnp.bfloat16)
    xk_b = xk.astype(jnp.bfloat16)
    # -||xi - xj||^2 = 2 xi.xj - |xi|^2 - |xj|^2.  bf16 operands on the MXU; the
    # resulting k-NN ranking is insensitive to the small rounding.
    inner = jax.lax.dot_general(xq_b, xk_b, (((1,), (1,)), ((), ())),
                                preferred_element_type=jnp.float32)      # (TQ, N)
    sq_q = jnp.sum(xq * xq, axis=1, keepdims=True)                       # (TQ, 1)
    negd = 2.0 * inner - sq_q - sqk_ref[0, 0]                            # (TQ, N)

    # Exact iterative top-k over the neighbor axis (k is small): no (N,N) HBM matrix,
    # no XLA sort.  Ties break on the lowest index (same as lax.top_k).
    tq, n = negd.shape
    col = jax.lax.broadcasted_iota(jnp.int32, (tq, n), 1)
    col_f = col.astype(jnp.float32)
    kcol = jax.lax.broadcasted_iota(jnp.int32, (tq, k), 1)
    big = jnp.float32(n)
    vals = negd
    out_idx = jnp.zeros((tq, k), jnp.int32)
    for j in range(k):
        row_max = jnp.max(vals, axis=1, keepdims=True)                   # (TQ, 1)
        sel = jnp.min(jnp.where(vals >= row_max, col_f, big),
                      axis=1, keepdims=True).astype(jnp.int32)           # first argmax
        out_idx = jnp.where(kcol == j, sel, out_idx)
        vals = jnp.where(col == sel, -jnp.inf, vals)
    idx_ref[0, 0] = out_idx

    # EdgeConv projections (BN scale is applied AFTER the max in kernel 2a):
    #   A  = x @ W_diff            (gathered per neighbor in the next kernel)
    #   Bc = x @ (W_ctr - W_diff)  (center term, added once)
    a = jnp.dot(xq_b, wd_ref[0].astype(jnp.bfloat16),
                preferred_element_type=jnp.float32)
    bc = jnp.dot(xq_b, wcd_ref[0].astype(jnp.bfloat16),
                 preferred_element_type=jnp.float32)
    cout = a.shape[-1]
    ab_ref[0, 0, :, :cout] = a
    ab_ref[0, 0, :, cout:] = bc


def knn_and_project(x, sqk, wd, wcd, k):
    # x: (2, B, N, Cin)   sqk: (2, B, 1, N)   wd/wcd: (2, Cin, Cout)
    R, B, N, Cin = x.shape
    Cout = wd.shape[-1]
    TQ = _choose_tile(N, 256)
    return pl.pallas_call(
        functools.partial(_knn_proj_kernel, k=k),
        out_shape=(jax.ShapeDtypeStruct((R, B, N, 2 * Cout), jnp.float32),
                   jax.ShapeDtypeStruct((R, B, N, k), jnp.int32)),
        grid=(R, B, N // TQ),
        in_specs=[
            pl.BlockSpec((1, 1, TQ, Cin), lambda r, b, t: (r, b, t, 0)),
            pl.BlockSpec((1, 1, N, Cin), lambda r, b, t: (r, b, 0, 0)),
            pl.BlockSpec((1, 1, 1, N), lambda r, b, t: (r, b, 0, 0)),
            pl.BlockSpec((1, Cin, Cout), lambda r, b, t: (r, 0, 0)),
            pl.BlockSpec((1, Cin, Cout), lambda r, b, t: (r, 0, 0)),
        ],
        out_specs=[
            pl.BlockSpec((1, 1, TQ, 2 * Cout), lambda r, b, t: (r, b, t, 0)),
            pl.BlockSpec((1, 1, TQ, k), lambda r, b, t: (r, b, t, 0)),
        ],
        compiler_params=pltpu.CompilerParams(
            dimension_semantics=("parallel", "parallel", "parallel"),
            vmem_limit_bytes=VMEM_LIMIT),
    )(x, x, sqk, wd, wcd)


# --------------------------------------------------------------------------------------
# Kernel 2a: fused neighbor gather (one-hot matmuls on the MXU) + max/min over K +
#            BatchNorm + LeakyReLU.   grid = (branch, batch, point-tiles)
# --------------------------------------------------------------------------------------
def _edgeconv_kernel(abf_ref, abt_ref, idx_ref, s_ref, b_ref, y_ref, *, k, cout):
    a_all = abf_ref[0, 0, :, :cout]                         # (N, C) gather source
    bc = abt_ref[0, 0, :, cout:]                            # (TG, C) center term (tile)
    idx = idx_ref[0, 0]                                     # (TG, K) neighbor indices
    tg = idx.shape[0]
    n = a_all.shape[0]
    col = jax.lax.broadcasted_iota(jnp.int32, (tg, n), 1)
    # Row gather via one-hot matmuls: no (B, K, N, C) gathered tensor in HBM.
    mx = None
    mn = None
    for j in range(k):
        onehot = (col == idx[:, j:j + 1]).astype(jnp.float32)            # (TG, N)
        g = jnp.dot(onehot, a_all, preferred_element_type=jnp.float32)   # (TG, C)
        mx = g if mx is None else jnp.maximum(mx, g)
        mn = g if mn is None else jnp.minimum(mn, g)
    s = s_ref[0]                                            # (1, C) BN scale
    beta = b_ref[0]                                         # (1, C) BN shift
    # max over k commutes with BN+LeakyReLU only for positive scale; select max/min
    # per channel by the scale's sign so the result is exact for any gamma sign.
    z = jnp.where(s >= 0.0, mx, mn) + bc
    y_ref[0, 0] = _leaky(z * s + beta)


def edgeconv_combine(ab, idx, s, b, cout, k):
    R, B, N, _ = ab.shape
    TG = _choose_tile(N, 256)
    return pl.pallas_call(
        functools.partial(_edgeconv_kernel, k=k, cout=cout),
        out_shape=jax.ShapeDtypeStruct((R, B, N, cout), jnp.float32),
        grid=(R, B, N // TG),
        in_specs=[
            pl.BlockSpec((1, 1, N, 2 * cout), lambda r, b_, t: (r, b_, 0, 0)),
            pl.BlockSpec((1, 1, TG, 2 * cout), lambda r, b_, t: (r, b_, t, 0)),
            pl.BlockSpec((1, 1, TG, k), lambda r, b_, t: (r, b_, t, 0)),
            pl.BlockSpec((1, 1, cout), lambda r, b_, t: (r, 0, 0)),
            pl.BlockSpec((1, 1, cout), lambda r, b_, t: (r, 0, 0)),
        ],
        out_specs=pl.BlockSpec((1, 1, TG, cout), lambda r, b_, t: (r, b_, t, 0)),
        compiler_params=pltpu.CompilerParams(
            dimension_semantics=("parallel", "parallel", "parallel"),
            vmem_limit_bytes=VMEM_LIMIT),
    )(ab, ab, idx, s, b)


# --------------------------------------------------------------------------------------
# Kernel 2b: MultiheadAttention (seq == model batch B, batch == points) + residual.
#            grid = (branch, point-tiles); fori_loop over sequence positions with K/V
#            staged in VMEM scratch and online-softmax accumulators.
# --------------------------------------------------------------------------------------
def _attn_kernel(y_ref, hm_ref, hmt_ref, wq_ref, wk_ref, wv_ref, wo_ref,
                 bq_ref, bk_ref, bv_ref, bo_ref, o_ref,
                 k_sc, v_sc, m_sc, d_sc, acc_sc, *, heads):
    L = y_ref.shape[0]                  # MHA sequence length == model batch B
    C = y_ref.shape[2]
    scale = 1.0 / float(C // heads) ** 0.5
    hm = hm_ref[...]                    # (C, H) block-diag ones: per-head reduce
    hmt = hmt_ref[...]                  # (H, C) block-diag ones: per-head expand
    wq = wq_ref[0].astype(jnp.bfloat16)
    wk = wk_ref[0].astype(jnp.bfloat16)
    wv = wv_ref[0].astype(jnp.bfloat16)
    wo = wo_ref[0].astype(jnp.bfloat16)
    bq, bk, bv, bo = bq_ref[0], bk_ref[0], bv_ref[0], bo_ref[0]

    def kv_body(m, carry):
        ym = y_ref[m].astype(jnp.bfloat16)                               # (TA, C)
        k_sc[m] = jnp.dot(ym, wk, preferred_element_type=jnp.float32) + bk
        v_sc[m] = jnp.dot(ym, wv, preferred_element_type=jnp.float32) + bv
        return carry

    jax.lax.fori_loop(0, L, kv_body, 0)

    def q_body(l, carry):
        yl = y_ref[l]                                                    # (TA, C)
        q = jnp.dot(yl.astype(jnp.bfloat16), wq,
                    preferred_element_type=jnp.float32) + bq             # (TA, C)
        m_sc[...] = jnp.full(m_sc.shape, -1e30, m_sc.dtype)
        d_sc[...] = jnp.zeros(d_sc.shape, d_sc.dtype)
        acc_sc[...] = jnp.zeros(acc_sc.shape, acc_sc.dtype)

        def m_body(m, c2):
            lg = jnp.dot(q * k_sc[m], hm,
                         preferred_element_type=jnp.float32) * scale     # (TA, H)
            m_new = jnp.maximum(m_sc[...], lg)
            alpha = jnp.exp(m_sc[...] - m_new)
            p = jnp.exp(lg - m_new)
            d_sc[...] = alpha * d_sc[...] + p
            acc_sc[...] = (jnp.dot(alpha, hmt, preferred_element_type=jnp.float32)
                           * acc_sc[...]
                           + jnp.dot(p, hmt, preferred_element_type=jnp.float32)
                           * v_sc[m])
            m_sc[...] = m_new
            return c2

        jax.lax.fori_loop(0, L, m_body, 0)

        inv = jnp.dot(pl.reciprocal(d_sc[...], approx=True), hmt,
                      preferred_element_type=jnp.float32)                # (TA, C)
        att = acc_sc[...] * inv
        proj = jnp.dot(att.astype(jnp.bfloat16), wo,
                       preferred_element_type=jnp.float32) + bo
        o_ref[l] = proj + yl                                             # residual
        return carry

    jax.lax.fori_loop(0, L, q_body, 0)


def attention_residual(y, p):
    # y: (2, B, N, C)
    R, B, N, C = y.shape
    H = p["heads"]
    TA = _attn_tile(N, B, C, ATTN_VMEM_BUDGET)
    y_f = y.reshape(R * B, N, C)
    wspec = pl.BlockSpec((1, C, C), lambda r, t: (r, 0, 0))
    bspec = pl.BlockSpec((1, 1, C), lambda r, t: (r, 0, 0))
    out = pl.pallas_call(
        functools.partial(_attn_kernel, heads=H),
        out_shape=jax.ShapeDtypeStruct((R * B, N, C), jnp.float32),
        grid=(R, N // TA),
        in_specs=[
            pl.BlockSpec((B, TA, C), lambda r, t: (r, t, 0)),
            pl.BlockSpec((C, H), lambda r, t: (0, 0)),
            pl.BlockSpec((H, C), lambda r, t: (0, 0)),
            wspec, wspec, wspec, wspec,
            bspec, bspec, bspec, bspec,
        ],
        out_specs=pl.BlockSpec((B, TA, C), lambda r, t: (r, t, 0)),
        scratch_shapes=[
            pltpu.VMEM((B, TA, C), jnp.float32),    # K staged for all positions
            pltpu.VMEM((B, TA, C), jnp.float32),    # V staged for all positions
            pltpu.VMEM((TA, H), jnp.float32),       # running max
            pltpu.VMEM((TA, H), jnp.float32),       # running denominator
            pltpu.VMEM((TA, C), jnp.float32),       # running numerator
        ],
        compiler_params=pltpu.CompilerParams(
            dimension_semantics=("parallel", "parallel"),
            vmem_limit_bytes=VMEM_LIMIT),
    )(y_f, p["hm"], p["hmt"], p["wq"], p["wk"], p["wv"], p["wo"],
      p["bq"], p["bk"], p["bv"], p["bo"])
    return out.reshape(R, B, N, C)


# --------------------------------------------------------------------------------------
# Kernel 3: conv5 (1x1 conv + BN + LeakyReLU) fused with global max & avg pooling.
#           No 760-channel concat: per-stage partial matmuls against weight row-slices,
#           tiled over N with scratch accumulators.   grid = (batch, point-tiles)
# --------------------------------------------------------------------------------------
def _conv5_pool_kernel(*refs, cdims, n_points):
    n_stage = len(cdims)
    x_refs = refs[:n_stage]
    w_ref, s_ref, b_ref, o_ref, mx_sc, sm_sc = refs[n_stage:]
    t = pl.program_id(1)
    half = sum(cdims)
    e = s_ref.shape[-1]

    acc = None
    off = 0
    for i, cs in enumerate(cdims):
        xr = x_refs[i]                                       # (2, 1, TC, cs)
        w1 = w_ref[off:off + cs, :].astype(jnp.bfloat16)             # branch 1 rows
        w2 = w_ref[half + off:half + off + cs, :].astype(jnp.bfloat16)  # branch 2 rows
        part = (jnp.dot(xr[0, 0].astype(jnp.bfloat16), w1,
                        preferred_element_type=jnp.float32)
                + jnp.dot(xr[1, 0].astype(jnp.bfloat16), w2,
                          preferred_element_type=jnp.float32))
        acc = part if acc is None else acc + part
        off += cs

    y = _leaky(acc * s_ref[...] + b_ref[...])                # (TC, E)
    tile_mx = jnp.max(y, axis=0, keepdims=True)              # (1, E)
    tile_sm = jnp.sum(y, axis=0, keepdims=True)              # (1, E)

    @pl.when(t == 0)
    def _():
        mx_sc[...] = tile_mx
        sm_sc[...] = tile_sm

    @pl.when(t != 0)
    def _():
        mx_sc[...] = jnp.maximum(mx_sc[...], tile_mx)
        sm_sc[...] = sm_sc[...] + tile_sm

    o_ref[0, :, :e] = mx_sc[...]
    o_ref[0, :, e:] = sm_sc[...] * (1.0 / float(n_points))


def conv5_pool(stage_outs, w, s, b):
    cdims = tuple(int(o.shape[-1]) for o in stage_outs)
    _, B, N, _ = stage_outs[0].shape
    E = w.shape[1]
    TC = _choose_tile(N, 512)
    in_specs = [pl.BlockSpec((2, 1, TC, c), lambda bb, t: (0, bb, t, 0)) for c in cdims]
    in_specs += [
        pl.BlockSpec((w.shape[0], E), lambda bb, t: (0, 0)),
        pl.BlockSpec((1, E), lambda bb, t: (0, 0)),
        pl.BlockSpec((1, E), lambda bb, t: (0, 0)),
    ]
    out = pl.pallas_call(
        functools.partial(_conv5_pool_kernel, cdims=cdims, n_points=N),
        out_shape=jax.ShapeDtypeStruct((B, 1, 2 * E), jnp.float32),
        grid=(B, N // TC),
        in_specs=in_specs,
        out_specs=pl.BlockSpec((1, 1, 2 * E), lambda bb, t: (bb, 0, 0)),
        scratch_shapes=[pltpu.VMEM((1, E), jnp.float32),
                        pltpu.VMEM((1, E), jnp.float32)],
        compiler_params=pltpu.CompilerParams(
            dimension_semantics=("parallel", "arbitrary"),
            vmem_limit_bytes=VMEM_LIMIT),
    )(*stage_outs, w, s, b)
    return out[:, 0, :]


# --------------------------------------------------------------------------------------
# Kernel 4: fused 3-layer MLP head (linear1+bn6+leaky, linear2+bn7+leaky, linear3).
# --------------------------------------------------------------------------------------
def _head_kernel(x_ref, w1_ref, s1_ref, b1_ref, w2_ref, s2_ref, b2_ref,
                 w3_ref, b3_ref, o_ref):
    h = jnp.dot(x_ref[...], w1_ref[...], preferred_element_type=jnp.float32)
    h = _leaky(h * s1_ref[...] + b1_ref[...])
    # TODO(synk): Dropout (dp1/dp2) is inference-mode identity here (no RNG masking).
    h = jnp.dot(h, w2_ref[...], preferred_element_type=jnp.float32)
    h = _leaky(h * s2_ref[...] + b2_ref[...])
    o_ref[...] = jnp.dot(h, w3_ref[...], preferred_element_type=jnp.float32) + b3_ref[...]


def mlp_head(pooled, params):
    B = pooled.shape[0]
    ncls = params["lin3_w"].shape[1]
    return pl.pallas_call(
        _head_kernel,
        out_shape=jax.ShapeDtypeStruct((B, ncls), jnp.float32),
        compiler_params=pltpu.CompilerParams(vmem_limit_bytes=VMEM_LIMIT),
    )(pooled, params["lin1_w"], params["bn6_s"], params["bn6_b"],
      params["lin2_w"], params["bn7_s"], params["lin2_fold_b"],
      params["lin3_w"], params["lin3_b"])


# --------------------------------------------------------------------------------------
# Model glue
# --------------------------------------------------------------------------------------
def eblock_stage(h, p):
    # h: (2, B, N, Cin) -> (2, B, N, Cout); both branches of this stage in one pass.
    sqk = jnp.sum(h * h, axis=-1)[:, :, None, :]             # hoisted key squared norms
    ab, idx = knn_and_project(h, sqk, p["wd"], p["wcd"], p["k"])
    cout = p["wd"].shape[-1]
    y = edgeconv_combine(ab, idx, p["s"], p["b"], cout, p["k"])
    return attention_residual(y, p)


def model_forward(x, params):
    # x: (B, N, 3) channels-last (PyTorch reference input is (B, 3, N))
    h = jnp.stack([x, x], axis=0)                             # both branches share input
    outs = []
    for p in params["stages"]:
        h = eblock_stage(h, p)
        outs.append(h)
    # TODO(synk): per-tile stage outputs with Cout < 128 still store lane-sparse
    # (points-on-lanes layout for early stages not implemented).
    pooled = conv5_pool(outs, params["conv5_w"], params["conv5_s"], params["conv5_b"])
    return mlp_head(pooled, params)


# --------------------------------------------------------------------------------------
# Deterministic parameter initialization (shapes follow the PyTorch __init__)
# --------------------------------------------------------------------------------------
def _uinit(key, shape, fan_in):
    bound = 1.0 / (fan_in ** 0.5)
    return jax.random.uniform(key, shape, jnp.float32, -bound, bound)


def _bn_fold(key, dim):
    kg, kb = jax.random.split(key)
    gamma = 1.0 + 0.1 * jax.random.normal(kg, (1, dim), jnp.float32)
    beta = 0.1 * jax.random.normal(kb, (1, dim), jnp.float32)
    scale = gamma / jnp.sqrt(1.0 + BN_EPS)   # eval-mode BN, running stats (0, 1)
    return scale, beta


def _init_branch_block(key, cin, cout):
    ks = jax.random.split(key, 10)
    w = _uinit(ks[0], (2 * cin, cout), 2 * cin)               # Conv2d(2*cin, cout, 1)
    s, b = _bn_fold(ks[1], cout)
    return {
        "wd": w[:cin],                    # diff rows
        "wcd": w[cin:] - w[:cin],         # (center - diff) rows
        "s": s,                           # BN scale (applied after the max)
        "b": b,                           # BN shift
        "wq": _uinit(ks[2], (cout, cout), cout),
        "wk": _uinit(ks[3], (cout, cout), cout),
        "wv": _uinit(ks[4], (cout, cout), cout),
        "wo": _uinit(ks[5], (cout, cout), cout),
        "bq": _uinit(ks[6], (1, cout), cout),
        "bk": _uinit(ks[7], (1, cout), cout),
        "bv": _uinit(ks[8], (1, cout), cout),
        "bo": _uinit(ks[9], (1, cout), cout),
    }


def init_stage(key, cin, cout, heads, k):
    k1, k2 = jax.random.split(key)
    p1 = _init_branch_block(k1, cin, cout)
    p2 = _init_branch_block(k2, cin, cout)
    stage = {name: jnp.stack([p1[name], p2[name]], axis=0) for name in p1}
    stage["heads"] = heads
    stage["k"] = k
    dh = cout // heads
    rows = jnp.arange(cout)[:, None] // dh
    cols = jnp.arange(heads)[None, :]
    hm = (rows == cols).astype(jnp.float32)                   # (C, H) head-reduce mask
    stage["hm"] = hm
    stage["hmt"] = hm.T                                       # (H, C) head-expand mask
    return stage


def init_model(key, k, att_heads, emb_dims, n_classes):
    dims = [(3, 4, 1), (4, 8, att_heads), (8, 16, att_heads), (16, 32, att_heads),
            (32, 64, att_heads), (64, 128, att_heads), (128, 128, att_heads)]
    keys = jax.random.split(key, len(dims) + 9)
    stages = [init_stage(keys[i], ci, co, h, k) for i, (ci, co, h) in enumerate(dims)]
    cat_dim = 2 * sum(co for _, co, _ in dims)                # 760
    ki = iter(keys[len(dims):])
    conv5_s, conv5_b = _bn_fold(next(ki), emb_dims)
    bn6_s, bn6_b = _bn_fold(next(ki), 512)
    bn7_s, bn7_b = _bn_fold(next(ki), 256)
    lin2_bias = _uinit(next(ki), (1, 256), 512)
    lin3_bias = _uinit(next(ki), (1, n_classes), 256)
    return {
        "stages": stages,
        "conv5_w": _uinit(next(ki), (cat_dim, emb_dims), cat_dim),
        "conv5_s": conv5_s, "conv5_b": conv5_b,
        "lin1_w": _uinit(next(ki), (2 * emb_dims, 512), 2 * emb_dims),
        "bn6_s": bn6_s, "bn6_b": bn6_b,
        "lin2_w": _uinit(next(ki), (512, 256), 512),
        "bn7_s": bn7_s,
        # Linear2 bias folded through BatchNorm1d: (x@W + b)*s + beta
        "lin2_fold_b": lin2_bias * bn7_s + bn7_b,
        "lin3_w": _uinit(next(ki), (256, n_classes), 256),
        "lin3_b": lin3_bias,
    }


if __name__ == "__main__":
    key = jax.random.PRNGKey(0)
    k_param, k_x = jax.random.split(key)

    # Small, self-consistent config (args.k, args.att_heads, args.emb_dims, args.number_classes)
    K_NEIGHBORS = 4
    ATT_HEADS = 2
    EMB_DIMS = 64
    N_CLASSES = 10
    B, N = 2, 16

    params = init_model(k_param, K_NEIGHBORS, ATT_HEADS, EMB_DIMS, N_CLASSES)

    # layout: (B, N, 3) channels-last point cloud (PyTorch reference input is (B, 3, N))
    x = jax.random.normal(k_x, (B, N, 3), jnp.float32)

    out = model_forward(x, params)
    jax.block_until_ready(out)
    assert out.shape == (B, N_CLASSES) and out.dtype == jnp.float32
    assert bool(jnp.all(jnp.isfinite(out)))
    print("KERNEL_OK")
</pallas_src>

<mosaic_0001>
module attributes {stable_mosaic.version = 11 : i64} {
  func.func @_knn_proj_kernel(%arg0: i32, %arg1: i32, %arg2: i32, %arg3: memref<1x1x16x3xf32, #tpu.memory_space<vmem>>, %arg4: memref<1x1x16x3xf32, #tpu.memory_space<vmem>>, %arg5: memref<1x1x1x16xf32, #tpu.memory_space<vmem>>, %arg6: memref<1x3x4xf32, #tpu.memory_space<vmem>>, %arg7: memref<1x3x4xf32, #tpu.memory_space<vmem>>, %arg8: memref<1x1x16x8xf32, #tpu.memory_space<vmem>>, %arg9: memref<1x1x16x4xi32, #tpu.memory_space<vmem>>) attributes {dimension_semantics = [#tpu.dimension_semantics<parallel>, #tpu.dimension_semantics<parallel>, #tpu.dimension_semantics<parallel>], iteration_bounds = array<i64: 2, 2, 1>, scalar_prefetch = 0 : i64, scratch_operands = 0 : i64, tpu.core_type = #tpu.core_type<tc>, window_params = [{transform_indices = @transform_0, window_bounds = array<i64: 1, 1, 16, 3>}, {transform_indices = @transform_1, window_bounds = array<i64: 1, 1, 16, 3>}, {transform_indices = @transform_2, window_bounds = array<i64: 1, 1, 1, 16>}, {transform_indices = @transform_3, window_bounds = array<i64: 1, 3, 4>}, {transform_indices = @transform_4, window_bounds = array<i64: 1, 3, 4>}, {transform_indices = @transform_5, window_bounds = array<i64: 1, 1, 16, 8>}, {transform_indices = @transform_6, window_bounds = array<i64: 1, 1, 16, 4>}]} {
    %c0 = arith.constant 0 : index
    %c0_0 = arith.constant 0 : index
    %c0_1 = arith.constant 0 : index
    %c0_2 = arith.constant 0 : index
    %0 = vector.load %arg3[%c0, %c0_0, %c0_1, %c0_2] : memref<1x1x16x3xf32, #tpu.memory_space<vmem>>, vector<1x1x16x3xf32>
    %1 = vector.shape_cast %0 : vector<1x1x16x3xf32> to vector<16x3xf32>
    %c0_3 = arith.constant 0 : index
    %c0_4 = arith.constant 0 : index
    %c0_5 = arith.constant 0 : index
    %c0_6 = arith.constant 0 : index
    %2 = vector.load %arg4[%c0_3, %c0_4, %c0_5, %c0_6] : memref<1x1x16x3xf32, #tpu.memory_space<vmem>>, vector<1x1x16x3xf32>
    %3 = vector.shape_cast %2 : vector<1x1x16x3xf32> to vector<16x3xf32>
    %4 = arith.truncf %1 : vector<16x3xf32> to vector<16x3xbf16>
    %5 = arith.truncf %3 : vector<16x3xf32> to vector<16x3xbf16>
    %cst = arith.constant dense<0.000000e+00> : vector<16x16xf32>
    %6 = tpu.matmul %4, %5, %cst {dimension_numbers = #tpu.dot_dimension_numbers<[1], [1], [0], [0], [0, 0, 1, 0], [], []>} : vector<16x3xbf16>, vector<16x3xbf16>, vector<16x16xf32> -> vector<16x16xf32>
    %7 = arith.mulf %1, %1 : vector<16x3xf32>
    %cst_7 = arith.constant dense<0.000000e+00> : vector<16xf32>
    %8 = vector.multi_reduction <add>, %7, %cst_7 [1] : vector<16x3xf32> to vector<16xf32>
    %9 = vector.shape_cast %8 : vector<16xf32> to vector<16x1xf32>
    %cst_8 = arith.constant 2.000000e+00 : f32
    %10 = vector.broadcast %cst_8 : f32 to vector<16x16xf32>
    %11 = arith.mulf %10, %6 : vector<16x16xf32>
    %12 = vector.broadcast %9 : vector<16x1xf32> to vector<16x16xf32>
    %13 = arith.subf %11, %12 : vector<16x16xf32>
    %c0_9 = arith.constant 0 : index
    %c0_10 = arith.constant 0 : index
    %c0_11 = arith.constant 0 : index
    %c0_12 = arith.constant 0 : index
    %14 = vector.load %arg5[%c0_9, %c0_10, %c0_11, %c0_12] : memref<1x1x1x16xf32, #tpu.memory_space<vmem>>, vector<1x1x1x16xf32>
    %15 = vector.shape_cast %14 : vector<1x1x1x16xf32> to vector<1x16xf32>
    %16 = vector.broadcast %15 : vector<1x16xf32> to vector<16x16xf32>
    %17 = arith.subf %13, %16 : vector<16x16xf32>
    %18 = tpu.iota {dimensions = array<i32: 1>} : vector<16x16xi32>
    %19 = arith.sitofp %18 : vector<16x16xi32> to vector<16x16xf32>
    %20 = tpu.iota {dimensions = array<i32: 1>} : vector<16x4xi32>
    %c0_i32 = arith.constant 0 : i32
    %21 = vector.broadcast %c0_i32 : i32 to vector<16x4xi32>
    %cst_13 = arith.constant dense<0xFF800000> : vector<16xf32>
    %22 = vector.multi_reduction <maximumf>, %17, %cst_13 [1] : vector<16x16xf32> to vector<16xf32>
    %23 = vector.shape_cast %22 : vector<16xf32> to vector<16x1xf32>
    %24 = vector.broadcast %23 : vector<16x1xf32> to vector<16x16xf32>
    %25 = arith.cmpf oge, %17, %24 : vector<16x16xf32>
    %cst_14 = arith.constant 1.600000e+01 : f32
    %26 = vector.broadcast %cst_14 : f32 to vector<16x16xf32>
    %27 = arith.select %25, %19, %26 : vector<16x16xi1>, vector<16x16xf32>
    %cst_15 = arith.constant dense<0x7F800000> : vector<16xf32>
    %28 = vector.multi_reduction <minimumf>, %27, %cst_15 [1] : vector<16x16xf32> to vector<16xf32>
    %29 = vector.shape_cast %28 : vector<16xf32> to vector<16x1xf32>
    %30 = arith.fptosi %29 : vector<16x1xf32> to vector<16x1xi32>
    %c0_i32_16 = arith.constant 0 : i32
    %31 = vector.broadcast %c0_i32_16 : i32 to vector<16x4xi32>
    %32 = arith.cmpi eq, %20, %31 : vector<16x4xi32>
    %33 = vector.shape_cast %30 : vector<16x1xi32> to vector<16x1xi32>
    %34 = vector.broadcast %33 : vector<16x1xi32> to vector<16x4xi32>
    %35 = arith.select %32, %34, %21 : vector<16x4xi1>, vector<16x4xi32>
    %36 = vector.broadcast %30 : vector<16x1xi32> to vector<16x16xi32>
    %37 = arith.cmpi eq, %18, %36 : vector<16x16xi32>
    %cst_17 = arith.constant 0xFF800000 : f32
    %38 = vector.broadcast %cst_17 : f32 to vector<16x16xf32>
    %39 = arith.select %37, %38, %17 : vector<16x16xi1>, vector<16x16xf32>
    %cst_18 = arith.constant dense<0xFF800000> : vector<16xf32>
    %40 = vector.multi_reduction <maximumf>, %39, %cst_18 [1] : vector<16x16xf32> to vector<16xf32>
    %41 = vector.shape_cast %40 : vector<16xf32> to vector<16x1xf32>
    %42 = vector.broadcast %41 : vector<16x1xf32> to vector<16x16xf32>
    %43 = arith.cmpf oge, %39, %42 : vector<16x16xf32>
    %cst_19 = arith.constant 1.600000e+01 : f32
    %44 = vector.broadcast %cst_19 : f32 to vector<16x16xf32>
    %45 = arith.select %43, %19, %44 : vector<16x16xi1>, vector<16x16xf32>
    %cst_20 = arith.constant dense<0x7F800000> : vector<16xf32>
    %46 = vector.multi_reduction <minimumf>, %45, %cst_20 [1] : vector<16x16xf32> to vector<16xf32>
    %47 = vector.shape_cast %46 : vector<16xf32> to vector<16x1xf32>
    %48 = arith.fptosi %47 : vector<16x1xf32> to vector<16x1xi32>
    %c1_i32 = arith.constant 1 : i32
    %49 = vector.broadcast %c1_i32 : i32 to vector<16x4xi32>
    %50 = arith.cmpi eq, %20, %49 : vector<16x4xi32>
    %51 = vector.shape_cast %48 : vector<16x1xi32> to vector<16x1xi32>
    %52 = vector.broadcast %51 : vector<16x1xi32> to vector<16x4xi32>
    %53 = arith.select %50, %52, %35 : vector<16x4xi1>, vector<16x4xi32>
    %54 = vector.broadcast %48 : vector<16x1xi32> to vector<16x16xi32>
    %55 = arith.cmpi eq, %18, %54 : vector<16x16xi32>
    %cst_21 = arith.constant 0xFF800000 : f32
    %56 = vector.broadcast %cst_21 : f32 to vector<16x16xf32>
    %57 = arith.select %55, %56, %39 : vector<16x16xi1>, vector<16x16xf32>
    %cst_22 = arith.constant dense<0xFF800000> : vector<16xf32>
    %58 = vector.multi_reduction <maximumf>, %57, %cst_22 [1] : vector<16x16xf32> to vector<16xf32>
    %59 = vector.shape_cast %58 : vector<16xf32> to vector<16x1xf32>
    %60 = vector.broadcast %59 : vector<16x1xf32> to vector<16x16xf32>
    %61 = arith.cmpf oge, %57, %60 : vector<16x16xf32>
    %cst_23 = arith.constant 1.600000e+01 : f32
    %62 = vector.broadcast %cst_23 : f32 to vector<16x16xf32>
    %63 = arith.select %61, %19, %62 : vector<16x16xi1>, vector<16x16xf32>
    %cst_24 = arith.constant dense<0x7F800000> : vector<16xf32>
    %64 = vector.multi_reduction <minimumf>, %63, %cst_24 [1] : vector<16x16xf32> to vector<16xf32>
    %65 = vector.shape_cast %64 : vector<16xf32> to vector<16x1xf32>
    %66 = arith.fptosi %65 : vector<16x1xf32> to vector<16x1xi32>
    %c2_i32 = arith.constant 2 : i32
    %67 = vector.broadcast %c2_i32 : i32 to vector<16x4xi32>
    %68 = arith.cmpi eq, %20, %67 : vector<16x4xi32>
    %69 = vector.shape_cast %66 : vector<16x1xi32> to vector<16x1xi32>
    %70 = vector.broadcast %69 : vector<16x1xi32> to vector<16x4xi32>
    %71 = arith.select %68, %70, %53 : vector<16x4xi1>, vector<16x4xi32>
    %72 = vector.broadcast %66 : vector<16x1xi32> to vector<16x16xi32>
    %73 = arith.cmpi eq, %18, %72 : vector<16x16xi32>
    %cst_25 = arith.constant 0xFF800000 : f32
    %74 = vector.broadcast %cst_25 : f32 to vector<16x16xf32>
    %75 = arith.select %73, %74, %57 : vector<16x16xi1>, vector<16x16xf32>
    %cst_26 = arith.constant dense<0xFF800000> : vector<16xf32>
    %76 = vector.multi_reduction <maximumf>, %75, %cst_26 [1] : vector<16x16xf32> to vector<16xf32>
    %77 = vector.shape_cast %76 : vector<16xf32> to vector<16x1xf32>
    %78 = vector.broadcast %77 : vector<16x1xf32> to vector<16x16xf32>
    %79 = arith.cmpf oge, %75, %78 : vector<16x16xf32>
    %cst_27 = arith.constant 1.600000e+01 : f32
    %80 = vector.broadcast %cst_27 : f32 to vector<16x16xf32>
    %81 = arith.select %79, %19, %80 : vector<16x16xi1>, vector<16x16xf32>
    %cst_28 = arith.constant dense<0x7F800000> : vector<16xf32>
    %82 = vector.multi_reduction <minimumf>, %81, %cst_28 [1] : vector<16x16xf32> to vector<16xf32>
    %83 = vector.shape_cast %82 : vector<16xf32> to vector<16x1xf32>
    %84 = arith.fptosi %83 : vector<16x1xf32> to vector<16x1xi32>
    %c3_i32 = arith.constant 3 : i32
    %85 = vector.broadcast %c3_i32 : i32 to vector<16x4xi32>
    %86 = arith.cmpi eq, %20, %85 : vector<16x4xi32>
    %87 = vector.shape_cast %84 : vector<16x1xi32> to vector<16x1xi32>
    %88 = vector.broadcast %87 : vector<16x1xi32> to vector<16x4xi32>
    %89 = arith.select %86, %88, %71 : vector<16x4xi1>, vector<16x4xi32>
    %c0_29 = arith.constant 0 : index
    %c0_30 = arith.constant 0 : index
    %c0_31 = arith.constant 0 : index
    %c0_32 = arith.constant 0 : index
    %90 = vector.load %arg9[%c0_29, %c0_30, %c0_31, %c0_32] : memref<1x1x16x4xi32, #tpu.memory_space<vmem>>, vector<1x1x16x4xi32>
    %91 = vector.shape_cast %90 : vector<1x1x16x4xi32> to vector<16x4xi32>
    %92 = vector.shape_cast %89 : vector<16x4xi32> to vector<1x1x16x4xi32>
    tpu.vector_store %arg9[%c0_29, %c0_30, %c0_31, %c0_32], %92 {strides = array<i32>} : memref<1x1x16x4xi32, #tpu.memory_space<vmem>>, vector<1x1x16x4xi32>,
    %c0_33 = arith.constant 0 : index
    %c0_34 = arith.constant 0 : index
    %c0_35 = arith.constant 0 : index
    %93 = vector.load %arg6[%c0_33, %c0_34, %c0_35] : memref<1x3x4xf32, #tpu.memory_space<vmem>>, vector<1x3x4xf32>
    %94 = vector.shape_cast %93 : vector<1x3x4xf32> to vector<3x4xf32>
    %95 = arith.truncf %94 : vector<3x4xf32> to vector<3x4xbf16>
    %cst_36 = arith.constant dense<0.000000e+00> : vector<16x4xf32>
    %96 = tpu.matmul %4, %95, %cst_36 {dimension_numbers = #tpu.dot_dimension_numbers<[1], [0], [0], [1], [0, 0, 1, 1], [], []>} : vector<16x3xbf16>, vector<3x4xbf16>, vector<16x4xf32> -> vector<16x4xf32>
    %c0_37 = arith.constant 0 : index
    %c0_38 = arith.constant 0 : index
    %c0_39 = arith.constant 0 : index
    %97 = vector.load %arg7[%c0_37, %c0_38, %c0_39] : memref<1x3x4xf32, #tpu.memory_space<vmem>>, vector<1x3x4xf32>
    %98 = vector.shape_cast %97 : vector<1x3x4xf32> to vector<3x4xf32>
    %99 = arith.truncf %98 : vector<3x4xf32> to vector<3x4xbf16>
    %cst_40 = arith.constant dense<0.000000e+00> : vector<16x4xf32>
    %100 = tpu.matmul %4, %99, %cst_40 {dimension_numbers = #tpu.dot_dimension_numbers<[1], [0], [0], [1], [0, 0, 1, 1], [], []>} : vector<16x3xbf16>, vector<3x4xbf16>, vector<16x4xf32> -> vector<16x4xf32>
    %c0_41 = arith.constant 0 : index
    %c0_42 = arith.constant 0 : index
    %c0_43 = arith.constant 0 : index
    %c0_44 = arith.constant 0 : index
    %101 = vector.load %arg8[%c0_41, %c0_42, %c0_43, %c0_44] : memref<1x1x16x8xf32, #tpu.memory_space<vmem>>, vector<1x1x16x4xf32>
    %102 = vector.shape_cast %101 : vector<1x1x16x4xf32> to vector<16x4xf32>
    %103 = vector.shape_cast %96 : vector<16x4xf32> to vector<1x1x16x4xf32>
    tpu.vector_store %arg8[%c0_41, %c0_42, %c0_43, %c0_44], %103 {strides = array<i32>} : memref<1x1x16x8xf32, #tpu.memory_space<vmem>>, vector<1x1x16x4xf32>,
    %c0_45 = arith.constant 0 : index
    %c0_46 = arith.constant 0 : index
    %c0_47 = arith.constant 0 : index
    %c4 = arith.constant 4 : index
    %104 = vector.load %arg8[%c0_45, %c0_46, %c0_47, %c4] : memref<1x1x16x8xf32, #tpu.memory_space<vmem>>, vector<1x1x16x4xf32>
    %105 = vector.shape_cast %104 : vector<1x1x16x4xf32> to vector<16x4xf32>
    %106 = vector.shape_cast %100 : vector<16x4xf32> to vector<1x1x16x4xf32>
    tpu.vector_store %arg8[%c0_45, %c0_46, %c0_47, %c4], %106 {strides = array<i32>} : memref<1x1x16x8xf32, #tpu.memory_space<vmem>>, vector<1x1x16x4xf32>,
    return
  }
  func.func @transform_0(%arg0: i32, %arg1: i32, %arg2: i32) -> (i32, i32, i32, i32) {
    %c0_i32 = arith.constant 0 : i32
    %c0_i32_0 = arith.constant 0 : i32
    return %arg0, %arg1, %arg2, %c0_i32 : i32, i32, i32, i32
  }
  func.func @transform_1(%arg0: i32, %arg1: i32, %arg2: i32) -> (i32, i32, i32, i32) {
    %c0_i32 = arith.constant 0 : i32
    %c0_i32_0 = arith.constant 0 : i32
    %c0_i32_1 = arith.constant 0 : i32
    return %arg0, %arg1, %c0_i32, %c0_i32_0 : i32, i32, i32, i32
  }
  func.func @transform_2(%arg0: i32, %arg1: i32, %arg2: i32) -> (i32, i32, i32, i32) {
    %c0_i32 = arith.constant 0 : i32
    %c0_i32_0 = arith.constant 0 : i32
    %c0_i32_1 = arith.constant 0 : i32
    return %arg0, %arg1, %c0_i32, %c0_i32_0 : i32, i32, i32, i32
  }
  func.func @transform_3(%arg0: i32, %arg1: i32, %arg2: i32) -> (i32, i32, i32) {
    %c0_i32 = arith.constant 0 : i32
    %c0_i32_0 = arith.constant 0 : i32
    %c0_i32_1 = arith.constant 0 : i32
    return %arg0, %c0_i32, %c0_i32_0 : i32, i32, i32
  }
  func.func @transform_4(%arg0: i32, %arg1: i32, %arg2: i32) -> (i32, i32, i32) {
    %c0_i32 = arith.constant 0 : i32
    %c0_i32_0 = arith.constant 0 : i32
    %c0_i32_1 = arith.constant 0 : i32
    return %arg0, %c0_i32, %c0_i32_0 : i32, i32, i32
  }
  func.func @transform_5(%arg0: i32, %arg1: i32, %arg2: i32) -> (i32, i32, i32, i32) {
    %c0_i32 = arith.constant 0 : i32
    %c0_i32_0 = arith.constant 0 : i32
    return %arg0, %arg1, %arg2, %c0_i32 : i32, i32, i32, i32
  }
  func.func @transform_6(%arg0: i32, %arg1: i32, %arg2: i32) -> (i32, i32, i32, i32) {
    %c0_i32 = arith.constant 0 : i32
    %c0_i32_0 = arith.constant 0 : i32
    return %arg0, %arg1, %arg2, %c0_i32 : i32, i32, i32, i32
  }
}

</mosaic_0001>

<bundles_post_ra>
// kernel: tpu_custom_call.1
= control target key start
LH: loop header
LB: loop body
LE: loop exit
PB: predicated region body
PF: predicated region fallthrough
CT: control target
= control target key end

     0   :  { %s1170_s21 = smov 0   ;;  %s1172_s22 = smov 0   ;;  %s1320_s0 = inlined_call_operand.vmem [shape: f32[2,2,16,3], index: 0, kind: input, shape index: {}]   ;;  %s1321_s1 = inlined_call_operand.vmem [shape: f32[2,2,16,3], index: 1, kind: input, shape index: {}]   ;;  %s1322_s2 = inlined_call_operand.vmem [shape: f32[2,2,1,16], index: 2, kind: input, shape index: {}]   ;;  %s1323_s3 = inlined_call_operand.vmem [shape: f32[2,3,4], index: 3, kind: input, shape index: {}]   ;;  %s1324_s4 = inlined_call_operand.vmem [shape: f32[2,3,4], index: 4, kind: input, shape index: {}]   ;;  %s1325_s5 = inlined_call_operand.vmem [shape: f32[2,2,16,8], index: 5, kind: output, shape index: {0}]   ;;  %s1326_s6 = inlined_call_operand.vmem [shape: s32[2,2,16,4], index: 6, kind: output, shape index: {1}]  }
   0x1   :  { %s1174_s23 = smov 0   ;;  %s1176_s24 = smov 0  }
   0x2   :  { %s1178_s25 = smov 0  }
   0x3 LB: > { %s32_s26 = sadd.s32 1, %s1121_s23  ;;  %s36_s27 = sadd.s32 1, %s1125_s24  ;;  %s1129_s25 = sphi %s1178_s25, %s17_s25   ;;  %s1125_s24 = sphi %s1176_s24, %s1330_s24   ;;  %s1121_s23 = sphi %s1174_s23, %s1329_s23   ;;  %s1117_s22 = sphi %s1172_s22, %s1328_s22   ;;  %s1113_s21 = sphi %s1170_s21, %s1327_s21  }
   0x4   : > { %p34_p0 = scmp.ge.s32.totalorder %s32_s26, 2  ;;  %p985_p1 = scmp.ge.s32.totalorder %s1129_s25, 1 }
   0x5   : > { %p303_p2 = scmp.lt.s32.totalorder %s1129_s25, 5 }
   0x6   : > { %s1332_s26 = smov (%p34_p0, %s32_s26), 0  ;;  %s1334_s27 = smov (!%p34_p0, %s36_s27), %s1125_s24 }
   0x7   : > { %p304_p3 = pnand %p985_p1, %p303_p2  ;;  %p38_p4 = scmp.ge.s32.totalorder %s1334_s27, 2 }
   0x8   : > { %p387_p5 = scmp.lt.s32.totalorder (!%p304_p3), %s1117_s22, 1  ;;  %p389_p6 = scmp.lt.s32.totalorder (!%p304_p3), %s1113_s21, 1  ;;  %v1131_v0 = vmov (!%p304_p3), 0.0   ;;  %vm1132_vm0 = vmmov (!%p304_p3), 0   ;;  %vm459_vm1 = vcmask (!%p304_p3), 23552   ;;  %vm531_vm2 = vcmask (!%p304_p3), 130048  }
   0x9   : > { %s1336_s27 = smov (%p38_p4, %s1334_s27), 0  ;;  %307 = sbr.rel (%p304_p3) target bundleno = 1430 (0x596), region = 40 }
   0xa   : > { %1013 = vmatprep.subr.bf16.mxu0 (!%p304_p3), %v1131_v0  ;;  %1015 = vmatprep.mubr.msk.bf16.mxu0 (!%p304_p3), %vm1132_vm0, %v1131_v0  ;;  %v528_v27 = vlaneseq (!%p304_p3)  ;;  %vm633_vm13 = vcmask (!%p304_p3), 1040384   ;;  %vm634_vm14 = vcmask (!%p304_p3), 1041408  }
   0xb   : > { %1019 = vmatprep.subr.bf16.mxu1 (!%p304_p3), %v1131_v0  ;;  %1021 = vmatprep.mubr.msk.bf16.mxu1 (!%p304_p3), %vm1132_vm0, %v1131_v0 }
   0xc   : > { %v1235_v28 = vand.u32 (!%p304_p3), 127, %v528_v27 }
   0xe   : > { %v1238_v29 = vcvt.s32.f32 (!%p304_p3), %v1235_v28  ;;  %vm550_vm9 = vcmp.eq.s32.totalorder (!%p304_p3), %v1235_v28, 0  ;;  %vm575_vm10 = vcmp.eq.s32.totalorder (!%p304_p3), %v1235_v28, 1 }
  0x10   : > { %s1338_s22 = smov (!%p387_p5, %s1117_s22), 1  ;;  %s1340_s21 = smov (!%p389_p6, %s1113_s21), 1 }
  0x11   : > { %s1209_s28 = sshll.u32 %s1338_s22, 2  ;;  %s986_s29 = sshll.u32 %s1340_s21, 1 }
  0x12   : > { %s396_s30 = sadd.s32 %s1209_s28, %s986_s29  ;;  %s992_s14 = sshll.u32 %s1338_s22, 1 }
  0x13   : > { %s1212_s7 = sshll.u32 %s396_s30, 3  ;;  %s414_s15 = sadd.s32 %s992_s14, %s1340_s21 }
  0x14   : > { %s408_s10 = scalar_lea.vmem %s1321_s1, %s1212_s7  ;;  %s398_s13 = scalar_lea.vmem %s1320_s0, %s1212_s7 }
  0x15   : > { %v455_v1 = vld [vmem:[%s408_s10] sm:$0xff]  ;;  %v456_v2 = vld [vmem:[%s408_s10 + $0x8] sm:$0xff]  ;;  %s415_s18 = scalar_lea.vmem %s1322_s2, %s414_s15  ;;  %s419_s21 = scalar_lea.vmem %s1323_s3, %s1209_s28 }
  0x16   : > { %v453_v3 = vld [vmem:[%s398_s13] sm:$0xff]  ;;  %v458_v4 = vpack.c.bf16 %v456_v2, %v455_v1  ;;  %v454_v5 = vld [vmem:[%s398_s13 + $0x8] sm:$0xff]  ;;  %s423_s30 = scalar_lea.vmem %s1324_s4, %s1209_s28  ;;  %s1286_s9 = scalar_lea.vmem %s1325_s5, %s1212_s7 }
  0x17   : > { %v507_v6 = vmul.f32 %v453_v3, %v453_v3  ;;  %v508_v7 = vmul.f32 %v454_v5, %v454_v5  ;;  %v1225_v11 = vpack.c.bf16 %v454_v5, %v453_v3  ;;  %v1002_v17 = vld [vmem:[%s415_s18] ss:$0 sm:$0xff]  ;;  %s1134_s10 = smov 4   ;;  %s450_s13 = scalar_lea.vmem %s1326_s6, %s1212_s7 }
  0x18   : > { %v464_v8 = vsel %vm459_vm1, %v458_v4, 0  ;;  %v631_v3 = vld [vmem:[%s419_s21] sm:$0x7]  ;;  %v1133_v4 = vmov 65535  }
  0x19   : > { %v509_v9 = vsel %vm459_vm1, %v507_v6, 0.0  ;;  %1014 = vmatpush3.bf16.xpose.msra.mxu0 %v464_v8  ;;  %v512_v10 = vsel %vm459_vm1, %v508_v7, 0.0  ;;  %v635_v5 = vsel %vm633_vm13, 4294967295, %v1133_v4  ;;  %v681_v6 = vld [vmem:[%s423_s30] sm:$0x7]  ;;  %v632_v7 = vpack.c.bf16 %v631_v3, %v631_v3 }
  0x1a   : > { %510 = vadd.xlane.f32.xlu0 %v509_v9  ;;  %v636_v8 = vsel %vm634_vm14, %v635_v5, 0  ;;  %v682_v9 = vpack.c.bf16 %v681_v6, %v681_v6 }
  0x1e   : > { %513 = vadd.xlane.f32.xlu0 %v512_v10  ;;  %v638_v10 = vand.u32 %v636_v8, %v632_v7 }
  0x20   : > { %1016 = vmatmul.mubr.msk.bf16.vlgmr.msra.gmra.mrb[0].mxu0 %vm459_vm1, %v1225_v11  ;;  %1020 = vmatpush3.bf16.msra.mxu1 %v638_v10 }
  0x21   : > { %1025 = vmatprep.subr.bf16.mxu1 %v1131_v0 }
  0x23   : > { %1022 = vmatmul.mubr.msk.bf16.vlgmr.msra.gmra.mrb[0].mxu1 %vm459_vm1, %v1225_v11 }
  0x24   : > { %1027 = vmatprep.mubr.msk.bf16.mxu1 %vm1132_vm0, %v1131_v0  ;;  %vm600_vm0 = vcmp.eq.s32.totalorder %v1235_v28, 2 }
  0xa7   : > { %v511_v12 = vpop.xlane.xlu0 %510 }
  0xab   : > { %v514_v18 = vpop.xlane.xlu0 %513 }
  0xf3   : > { %v500_v13 = vpop.f32.mrb[0].mxu0 }
  0xf4   : > { %v515_v14 = vmul.f32 2.0, %v500_v13  ;;  %v1017_v15 = vpop.f32.mrb[1].mxu0 }
  0xf5   : > { %v503_v16 = vpop.f32.mrb[2].mxu0 }
  0xf6   : > { %v517_v19 = vsub.f32 %v515_v14, %v511_v12  ;;  %v516_v20 = vmul.f32 2.0, %v503_v16  ;;  %v1018_v21 = vpop.f32.mrb[3].mxu0  ;;  %v684_v12 = vand.u32 %v682_v9, %v636_v8 }
  0xf8   : > { %v518_v22 = vsub.f32 %v516_v20, %v514_v18  ;;  %v526_v23 = vsub.f32 %v517_v19, %v1002_v17  ;;  %1026 = vmatpush3.bf16.msra.mxu1 %v684_v12 }
  0xfa   : > { %v527_v24 = vsub.f32 %v518_v22, %v1002_v17  ;;  %v532_v25 = vsel %vm531_vm2, %v526_v23, -inf }
  0xfb   : > { %533 = vmax.xlane.f32.xlu1 %v532_v25  ;;  %1028 = vmatmul.mubr.msk.bf16.vlgmr.msra.gmra.mrb[4].mxu1 %vm459_vm1, %v1225_v11 }
  0xfc   : > { %v535_v26 = vsel %vm531_vm2, %v527_v24, -inf }
  0xff   : > { %536 = vmax.xlane.f32.xlu1 %v535_v26 }
 0x188   : > { %v534_v30 = vpop.xlane.xlu1 %533 }
 0x189   : > { %vm538_vm3 = vcmp.ge.f32.partialorder %v526_v23, %v534_v30 }
 0x18a   : > { %v540_v31 = vsel %vm538_vm3, %v1238_v29, 16.0 }
 0x18b   : > { %v542_v32 = vsel %vm531_vm2, %v540_v31, inf  ;;  %v674_v31 = vpop.f32.mrb[0].mxu1 }
 0x18c   : > { %543 = vmin.xlane.f32.xlu0 %v542_v32  ;;  %v537_v33 = vpop.xlane.xlu1 %536  ;;  %v1023_v32 = vpop.f32.mrb[1].mxu1 }
 0x18d   : > { %vm539_vm4 = vcmp.ge.f32.partialorder %v527_v24, %v537_v33  ;;  %v677_v33 = vpop.f32.mrb[2].mxu1 }
 0x18e   : > { %v541_v34 = vsel %vm539_vm4, %v1238_v29, 16.0 }
 0x18f   : > { %v545_v35 = vsel %vm531_vm2, %v541_v34, inf  ;;  %v1024_v34 = vpop.f32.mrb[3].mxu1 }
 0x190   : > { %546 = vmin.xlane.f32.xlu1 %v545_v35 }
 0x1ce   : > { %v720_v35 = vpop.f32.mrb[4].mxu1 }
 0x219   : > { %v544_v36 = vpop.xlane.xlu0 %543 }
 0x21a   : > { %v1031_v37 = vtrunc.f32 %v544_v36  ;;  %v1029_v36 = vpop.f32.mrb[5].mxu1 }
 0x21c   : > { %v1032_v38 = vcvt.f32.s32 %v1031_v37  ;;  %v723_v37 = vpop.f32.mrb[6].mxu1 }
 0x21d   : > { %v547_v39 = vpop.xlane.xlu1 %546 }
 0x21e   : > { %vm553_vm5 = vcmp.eq.s32.totalorder %v1235_v28, %v1032_v38  ;;  %v1033_v40 = vtrunc.f32 %v547_v39  ;;  %v551_v55 = vsel %vm550_vm9, %v1032_v38, 0  ;;  %v1030_v38 = vpop.f32.mrb[7].mxu1 }
 0x21f   : > { %v555_v41 = vsel %vm553_vm5, -inf, %v526_v23  ;;  %vm628_vm5 = vcmask 31744  }
 0x220   : > { %v1034_v42 = vcvt.f32.s32 %v1033_v40  ;;  %v557_v43 = vsel %vm531_vm2, %v555_v41, -inf  ;;  %727 = vst.msk [vmem:[%s1286_s9] sm:$0xff] %vm628_vm5, %v674_v31  ;;  %728 = vst.msk [vmem:[%s1286_s9 + $0x8] sm:$0xff] %vm628_vm5, %v677_v33 }
 0x221   : > { %558 = vmax.xlane.f32.xlu0 %v557_v43 }
 0x222   : > { %vm554_vm6 = vcmp.eq.s32.totalorder %v1235_v28, %v1034_v42  ;;  %v552_v62 = vsel %vm550_vm9, %v1034_v42, 0  ;;  %vm737_vm9 = vcmask 64544  }
 0x223   : > { %v556_v44 = vsel %vm554_vm6, -inf, %v527_v24 }
 0x224   : > { %v560_v45 = vsel %vm531_vm2, %v556_v44, -inf }
 0x225   : > { %561 = vmax.xlane.f32.xlu1 %v560_v45 }
 0x2ae   : > { %v559_v46 = vpop.xlane.xlu0 %558 }
 0x2af   : > { %vm563_vm7 = vcmp.ge.f32.partialorder %v555_v41, %v559_v46 }
 0x2b0   : > { %v565_v47 = vsel %vm563_vm7, %v1238_v29, 16.0 }
 0x2b1   : > { %v567_v48 = vsel %vm531_vm2, %v565_v47, inf }
 0x2b2   : > { %568 = vmin.xlane.f32.xlu0 %v567_v48  ;;  %v562_v49 = vpop.xlane.xlu1 %561 }
 0x2b3   : > { %vm564_vm8 = vcmp.ge.f32.partialorder %v556_v44, %v562_v49 }
 0x2b4   : > { %v566_v50 = vsel %vm564_vm8, %v1238_v29, 16.0  ;;  %vm625_vm8 = vcmp.eq.s32.totalorder %v1235_v28, 3 }
 0x2b5   : > { %v570_v51 = vsel %vm531_vm2, %v566_v50, inf }
 0x2b6   : > { %571 = vmin.xlane.f32.xlu1 %v570_v51 }
 0x33f   : > { %v569_v52 = vpop.xlane.xlu0 %568 }
 0x340   : > { %v1035_v53 = vtrunc.f32 %v569_v52 }
 0x342   : > { %v1036_v54 = vcvt.f32.s32 %v1035_v53 }
 0x343   : > { %v572_v56 = vpop.xlane.xlu1 %571 }
 0x344   : > { %v576_v57 = vsel %vm575_vm10, %v1036_v54, %v551_v55  ;;  %vm578_vm11 = vcmp.eq.s32.totalorder %v1235_v28, %v1036_v54  ;;  %v1037_v58 = vtrunc.f32 %v572_v56 }
 0x345   : > { %v580_v59 = vsel %vm578_vm11, -inf, %v555_v41 }
 0x346   : > { %v1038_v60 = vcvt.f32.s32 %v1037_v58  ;;  %v582_v61 = vsel %vm531_vm2, %v580_v59, -inf }
 0x347   : > { %583 = vmax.xlane.f32.xlu0 %v582_v61 }
 0x348   : > { %v577_v63 = vsel %vm575_vm10, %v1038_v60, %v552_v62  ;;  %vm579_vm12 = vcmp.eq.s32.totalorder %v1235_v28, %v1038_v60 }
 0x349   : > { %v581_v1 = vsel %vm579_vm12, -inf, %v556_v44 }
 0x34a   : > { %v585_v2 = vsel %vm531_vm2, %v581_v1, -inf }
 0x34b   : > { %586 = vmax.xlane.f32.xlu1 %v585_v2 }
 0x3d4   : > { %v584_v13 = vpop.xlane.xlu0 %583 }
 0x3d5   : > { %vm588_vm15 = vcmp.ge.f32.partialorder %v580_v59, %v584_v13 }
 0x3d6   : > { %v590_v14 = vsel %vm588_vm15, %v1238_v29, 16.0 }
 0x3d7   : > { %v592_v15 = vsel %vm531_vm2, %v590_v14, inf }
 0x3d8   : > { %593 = vmin.xlane.f32.xlu0 %v592_v15  ;;  %v587_v16 = vpop.xlane.xlu1 %586 }
 0x3d9   : > { %vm589_vm3 = vcmp.ge.f32.partialorder %v581_v1, %v587_v16 }
 0x3da   : > { %v591_v17 = vsel %vm589_vm3, %v1238_v29, 16.0 }
 0x3db   : > { %v595_v18 = vsel %vm531_vm2, %v591_v17, inf }
 0x3dc   : > { %596 = vmin.xlane.f32.xlu1 %v595_v18 }
 0x465   : > { %v594_v19 = vpop.xlane.xlu0 %593 }
 0x466   : > { %v1039_v20 = vtrunc.f32 %v594_v19 }
 0x468   : > { %v1040_v0 = vcvt.f32.s32 %v1039_v20 }
 0x469   : > { %v597_v11 = vpop.xlane.xlu1 %596 }
 0x46a   : > { %v601_v21 = vsel %vm600_vm0, %v1040_v0, %v576_v57  ;;  %v1041_v22 = vtrunc.f32 %v597_v11  ;;  %vm603_vm1 = vcmp.eq.s32.totalorder %v1235_v28, %v1040_v0 }
 0x46b   : > { %v605_v23 = vsel %vm603_vm1, -inf, %v580_v59 }
 0x46c   : > { %v1042_v24 = vcvt.f32.s32 %v1041_v22  ;;  %v607_v25 = vsel %vm531_vm2, %v605_v23, -inf }
 0x46d   : > { %608 = vmax.xlane.f32.xlu0 %v607_v25 }
 0x46e   : > { %v602_v26 = vsel %vm600_vm0, %v1042_v24, %v577_v63  ;;  %vm604_vm4 = vcmp.eq.s32.totalorder %v1235_v28, %v1042_v24 }
 0x46f   : > { %v606_v27 = vsel %vm604_vm4, -inf, %v581_v1 }
 0x470   : > { %v610_v30 = vsel %vm531_vm2, %v606_v27, -inf }
 0x471   : > { %611 = vmax.xlane.f32.xlu1 %v610_v30 }
 0x4fa   : > { %v609_v39 = vpop.xlane.xlu0 %608 }
 0x4fb   : > { %vm613_vm6 = vcmp.ge.f32.partialorder %v605_v23, %v609_v39 }
 0x4fc   : > { %v615_v40 = vsel %vm613_vm6, %v1238_v29, 16.0 }
 0x4fd   : > { %v617_v41 = vsel %vm531_vm2, %v615_v40, inf }
 0x4fe   : > { %618 = vmin.xlane.f32.xlu0 %v617_v41  ;;  %v612_v42 = vpop.xlane.xlu1 %611 }
 0x4ff   : > { %vm614_vm7 = vcmp.ge.f32.partialorder %v606_v27, %v612_v42 }
 0x500   : > { %v616_v43 = vsel %vm614_vm7, %v1238_v29, 16.0 }
 0x501   : > { %v620_v44 = vsel %vm531_vm2, %v616_v43, inf }
 0x502   : > { %621 = vmin.xlane.f32.xlu1 %v620_v44 }
 0x513   : > { %733 = vrot.lane.b32.xlu1 %v723_v37, %s1134_s10 }
 0x514   : > { %731 = vrot.lane.b32.xlu0 %v720_v35, %s1134_s10 }
 0x58b   : > { %v619_v45 = vpop.xlane.xlu0 %618 }
 0x58c   : > { %v1043_v46 = vtrunc.f32 %v619_v45 }
 0x58e   : > { %v1044_v47 = vcvt.f32.s32 %v1043_v46 }
 0x58f   : > { %v622_v48 = vpop.xlane.xlu1 %621  ;;  %v732_v29 = vpop.permute.xlu0 %731 }
 0x590   : > { %v626_v49 = vsel %vm625_vm8, %v1044_v47, %v601_v21  ;;  %v1045_v50 = vtrunc.f32 %v622_v48  ;;  %738 = vst.msk [vmem:[%s1286_s9] sm:$0xff] %vm737_vm9, %v732_v29 }
 0x591   : > { %629 = vst.msk [vmem:[%s450_s13] sm:$0xff] %vm628_vm5, %v626_v49 }
 0x592   : > { %v1046_v51 = vcvt.f32.s32 %v1045_v50 }
 0x593   : > { %v734_v52 = vpop.permute.xlu1 %733 }
 0x594   : > { %v627_v53 = vsel %vm625_vm8, %v1046_v51, %v602_v26  ;;  %739 = vst.msk [vmem:[%s1286_s9 + $0x8] sm:$0xff] %vm737_vm9, %v734_v52 }
 0x595   : > { %630 = vst.msk [vmem:[%s450_s13 + $0x8] sm:$0xff] %vm628_vm5, %v627_v53 }
 0x596 PF: > { %s17_s25 = sadd.s32 1, %s1129_s25   ;;  %s1327_s21 = smov %s1121_s23 }
 0x597   : > { %p14_p7 = scmp.ge.s32.totalorder %s17_s25, 6   ;;  %s1328_s22 = smov %s1125_s24 }
 0x598   : > { %s1329_s23 = smov %s1332_s26  ;;  %s1330_s24 = smov %s1336_s27 }
 0x599   :  { %16 = sbr.rel (!%p14_p7) target bundleno = 3 (0x3), region = 94 }

</bundles_post_ra>
